<compile_context>
chip_gen: v7x
topology: tpu7x:2x2x1
jax: 0.10.0
libtpu: 0.0.40
codegen_flags: <defaults>
</compile_context>

<pallas_src>
import math

import jax
import jax.numpy as jnp
from jax.experimental import pallas as pl
from jax.experimental.pallas import tpu as pltpu

_VMEM_BUDGET = 48 * 1024 * 1024   # conservative: leaves headroom inside v7x's 64 MiB VMEM
_WEIGHT_SINGLE_BUFFER = [True]    # flipped off if this jax build rejects pl.Buffered(1)


def _round_up(n, m):
    return ((n + m - 1) // m) * m


def _min_sublane_tile(dtype):
    # minimum second-minor tile per dtype packing (f32: 8, bf16: 16, int8/fp8: 32)
    return {4: 8, 2: 16, 1: 32}.get(jnp.dtype(dtype).itemsize, 8)


def _make_kernel(act: bool, lhs_dtype):
    def two_linear_kernel(x_ref, w1t_ref, w2t_ref, o_ref):
        x = x_ref[...].astype(lhs_dtype)
        # hidden = x @ W1^T  (f32 accumulation on the MXU)
        h = jnp.dot(x, w1t_ref[...], preferred_element_type=jnp.float32)
        if act:
            # swish in f32 (v5e VPU/EUP have no bf16 path); reciprocal -> EUP slot.
            h = h * pl.reciprocal(1.0 + jnp.exp(-h), approx=True)
        h = h.astype(lhs_dtype)               # MXU-friendly LHS for the second pass
        y = jnp.dot(h, w2t_ref[...], preferred_element_type=jnp.float32)
        if act:
            y = y * pl.reciprocal(1.0 + jnp.exp(-y), approx=True)
        o_ref[...] = y.astype(o_ref.dtype)
    return two_linear_kernel


def prepare_two_linear_weights(w1, w2, dtype=None):
    """One-time transform of PyTorch-layout weights (out, in) -> (in, out).

    Call once and cache/reuse; a per-call jnp.transpose costs a full
    weight-sized HBM read+write for nothing.
    """
    w1t = jnp.transpose(jnp.asarray(w1))
    w2t = jnp.transpose(jnp.asarray(w2))
    if dtype is not None:
        w1t, w2t = w1t.astype(dtype), w2t.astype(dtype)
    return w1t, w2t


def _vmem_footprint(tm, in_ch, mid, out_ch, x_item, w_item, lhs_item, weight_bufs):
    weights = (in_ch * mid + mid * out_ch) * w_item * weight_bufs
    io = 2 * tm * (in_ch + out_ch) * x_item                   # double-buffered x / out tiles
    tmp = tm * (in_ch * lhs_item + mid * (4 + lhs_item) + out_ch * 4)  # casts + f32 h / y temps
    return weights + io + tmp


def two_linear_apply(x, w1t, w2t, *, act=False, tm=512, mxu_bf16=False):
    """x: (..., in_ch); w1t: (in_ch, mid); w2t: (mid, out_ch)  (pre-transposed)."""
    in_ch = x.shape[-1]
    mid = w1t.shape[1]
    out_ch = w2t.shape[1]
    assert w1t.shape[0] == in_ch and w2t.shape[0] == mid
    lead = x.shape[:-1]
    rows = int(math.prod(lead))
    out_dtype = x.dtype

    if rows == 0:                                       # empty-batch guard
        return jnp.zeros((*lead, out_ch), out_dtype)

    # Optional bf16 MXU operands (f32 accumulate) for f32 inputs: v6e/v7x MXU fill.
    use_bf16 = bool(mxu_bf16) and x.dtype == jnp.float32
    lhs_dtype = jnp.bfloat16 if use_bf16 else x.dtype
    if use_bf16:
        w1t, w2t = w1t.astype(jnp.bfloat16), w2t.astype(jnp.bfloat16)

    x2d = x.reshape(rows, in_ch)
    x_item = jnp.dtype(x.dtype).itemsize
    w_item = jnp.dtype(w1t.dtype).itemsize
    lhs_item = jnp.dtype(lhs_dtype).itemsize
    min_tile = max(_min_sublane_tile(x.dtype), _min_sublane_tile(lhs_dtype))

    def pick_tm(weight_bufs):
        t = max(min_tile, min(_round_up(tm, min_tile), _round_up(rows, min_tile)))
        if rows >= 2 * min_tile:        # >= 2 row tiles when possible (v7x has 2 TCs)
            t = min(t, _round_up(-(-rows // 2), min_tile))
        while t > min_tile and _vmem_footprint(
                t, in_ch, mid, out_ch, x_item, w_item, lhs_item, weight_bufs) > _VMEM_BUDGET:
            t = max(min_tile, _round_up(t // 2, min_tile))
        return t

    def run(weight_bufs):
        t = pick_tm(weight_bufs)
        grid = (pl.cdiv(rows, t),)
        wkw = {"pipeline_mode": pl.Buffered(1)} if weight_bufs == 1 else {}
        vmem_limit = int(min(56 << 20, max(32 << 20, 2 * _vmem_footprint(
            t, in_ch, mid, out_ch, x_item, w_item, lhs_item, weight_bufs))))
        return pl.pallas_call(
            _make_kernel(act, lhs_dtype),
            out_shape=jax.ShapeDtypeStruct((rows, out_ch), out_dtype),
            grid_spec=pltpu.PrefetchScalarGridSpec(
                num_scalar_prefetch=0,
                grid=grid,
                in_specs=[
                    # x row tiles stream through VMEM; ragged last tile is masked.
                    pl.BlockSpec((t, in_ch), lambda i: (i, 0)),
                    # weights: constant index_map -> DMA'd once, VMEM-resident.
                    pl.BlockSpec((in_ch, mid), lambda i: (0, 0), **wkw),
                    pl.BlockSpec((mid, out_ch), lambda i: (0, 0), **wkw),
                ],
                out_specs=pl.BlockSpec((t, out_ch), lambda i: (i, 0)),
            ),
            compiler_params=pltpu.CompilerParams(
                # TODO(synk): on v7x, pltpu.CORE_PARALLEL on the row axis forces an
                # explicit 2-TensorCore split; "parallel" is the portable default.
                dimension_semantics=("parallel",),
                vmem_limit_bytes=vmem_limit,
            ),
        )(x2d, w1t, w2t)

    if _WEIGHT_SINGLE_BUFFER[0]:
        try:
            out2d = run(1)
        except Exception:            # pl.Buffered(1) unsupported on this build -> default buffering
            _WEIGHT_SINGLE_BUFFER[0] = False
            out2d = run(2)
    else:
        out2d = run(2)

    return out2d.reshape(*lead, out_ch)


def two_linear(x, w1, w2, *, act=False, tm=512, mxu_bf16=False):
    """Module-equivalent API taking PyTorch-layout weights (transposes per call).

    Prefer prepare_two_linear_weights() + two_linear_apply() and reuse the
    prepared weights across calls.
    """
    w1t, w2t = prepare_two_linear_weights(w1, w2)
    return two_linear_apply(x, w1t, w2t, act=act, tm=tm, mxu_bf16=mxu_bf16)


def glorot_uniform(key, shape):
    # Matches torch_geometric inits.glorot: U(-a, a), a = sqrt(6 / (fan_in + fan_out))
    fan_out, fan_in = shape
    a = math.sqrt(6.0 / (fan_in + fan_out))
    return jax.random.uniform(key, shape, jnp.float32, minval=-a, maxval=a)


def _reference(x, w1, w2, act):
    r = x @ w1.T
    if act:
        r = r * jax.nn.sigmoid(r)
    r = r @ w2.T
    if act:
        r = r * jax.nn.sigmoid(r)
    return r


if __name__ == "__main__":
    # TwoLinear(in_channels=32, middle_channels=64, out_channels=32, bias=False, act=False)
    in_ch, mid_ch, out_ch = 32, 64, 32

    key = jax.random.PRNGKey(0)
    kx, k1, k2 = jax.random.split(key, 3)

    x = jax.random.normal(kx, (2, 8, in_ch), jnp.float32)     # (batch=2, seq=8, in_ch)
    w1 = glorot_uniform(k1, (mid_ch, in_ch))                   # lin1.weight (out, in)
    w2 = glorot_uniform(k2, (out_ch, mid_ch))                  # lin2.weight (out, in)
    # TODO(synk): bias=False is the module default, so the bias add is omitted.

    # One-time weight preparation (reused by every call below).
    w1t, w2t = prepare_two_linear_weights(w1, w2)

    # Default path (act=False, matches module defaults) - full f32 math.
    out = two_linear_apply(x, w1t, w2t, act=False)
    jax.block_until_ready(out)
    assert out.shape == (2, 8, out_ch)
    assert jnp.allclose(out, _reference(x, w1, w2, False), atol=1e-5, rtol=1e-5)

    # Swish path (act=True); approx EUP reciprocal -> slightly looser tolerance.
    out_act = two_linear_apply(x, w1t, w2t, act=True)
    jax.block_until_ready(out_act)
    assert jnp.allclose(out_act, _reference(x, w1, w2, True), atol=1e-2, rtol=1e-2)

    # Ragged row grid (rows not divisible by tm) exercises the masked last tile.
    x_ragged = jax.random.normal(kx, (3, 5, in_ch), jnp.float32)   # 15 rows, tm=8 -> 2 tiles
    out_r = two_linear_apply(x_ragged, w1t, w2t, act=False, tm=8)
    jax.block_until_ready(out_r)
    assert out_r.shape == (3, 5, out_ch)
    assert jnp.allclose(out_r, _reference(x_ragged, w1, w2, False), atol=1e-5, rtol=1e-5)

    # bf16 MXU-operand path (v6e/v7x MXU-fill option): f32 in/out, bf16 matmul operands.
    out_bf = two_linear_apply(x, w1t, w2t, act=True, mxu_bf16=True)
    jax.block_until_ready(out_bf)
    assert jnp.allclose(out_bf, _reference(x, w1, w2, True), atol=3e-2, rtol=3e-2)

    print("KERNEL_OK")
</pallas_src>

<mosaic_0001>
module attributes {stable_mosaic.version = 11 : i64} {
  func.func @two_linear_kernel(%arg0: i32, %arg1: memref<8x32xf32, #tpu.memory_space<vmem>>, %arg2: memref<32x64xf32, #tpu.memory_space<vmem>>, %arg3: memref<64x32xf32, #tpu.memory_space<vmem>>, %arg4: memref<8x32xf32, #tpu.memory_space<vmem>>) attributes {dimension_semantics = [#tpu.dimension_semantics<parallel>], iteration_bounds = array<i64: 2>, scalar_prefetch = 0 : i64, scratch_operands = 0 : i64, tpu.core_type = #tpu.core_type<tc>, window_params = [{transform_indices = @transform_0, window_bounds = array<i64: 8, 32>}, {pipeline_mode = #tpu.pipeline_mode<synchronous>, transform_indices = @transform_1, window_bounds = array<i64: 32, 64>}, {pipeline_mode = #tpu.pipeline_mode<synchronous>, transform_indices = @transform_2, window_bounds = array<i64: 64, 32>}, {transform_indices = @transform_3, window_bounds = array<i64: 8, 32>}]} {
    %c0 = arith.constant 0 : index
    %c0_0 = arith.constant 0 : index
    %0 = vector.load %arg1[%c0, %c0_0] : memref<8x32xf32, #tpu.memory_space<vmem>>, vector<8x32xf32>
    %c0_1 = arith.constant 0 : index
    %c0_2 = arith.constant 0 : index
    %1 = vector.load %arg2[%c0_1, %c0_2] : memref<32x64xf32, #tpu.memory_space<vmem>>, vector<32x64xf32>
    %cst = arith.constant dense<0.000000e+00> : vector<8x64xf32>
    %2 = tpu.matmul %0, %1, %cst {dimension_numbers = #tpu.dot_dimension_numbers<[1], [0], [0], [1], [0, 0, 1, 1], [], []>} : vector<8x32xf32>, vector<32x64xf32>, vector<8x64xf32> -> vector<8x64xf32>
    %c0_3 = arith.constant 0 : index
    %c0_4 = arith.constant 0 : index
    %3 = vector.load %arg3[%c0_3, %c0_4] : memref<64x32xf32, #tpu.memory_space<vmem>>, vector<64x32xf32>
    %cst_5 = arith.constant dense<0.000000e+00> : vector<8x32xf32>
    %4 = tpu.matmul %2, %3, %cst_5 {dimension_numbers = #tpu.dot_dimension_numbers<[1], [0], [0], [1], [0, 0, 1, 1], [], []>} : vector<8x64xf32>, vector<64x32xf32>, vector<8x32xf32> -> vector<8x32xf32>
    %c0_6 = arith.constant 0 : index
    %c0_7 = arith.constant 0 : index
    %5 = vector.load %arg4[%c0_6, %c0_7] : memref<8x32xf32, #tpu.memory_space<vmem>>, vector<8x32xf32>
    tpu.vector_store %arg4[%c0_6, %c0_7], %4 {strides = array<i32>} : memref<8x32xf32, #tpu.memory_space<vmem>>, vector<8x32xf32>,
    return
  }
  func.func @transform_0(%arg0: i32) -> (i32, i32) {
    %c0_i32 = arith.constant 0 : i32
    %c0_i32_0 = arith.constant 0 : i32
    return %arg0, %c0_i32 : i32, i32
  }
  func.func @transform_1(%arg0: i32) -> (i32, i32) {
    %c0_i32 = arith.constant 0 : i32
    %c0_i32_0 = arith.constant 0 : i32
    %c0_i32_1 = arith.constant 0 : i32
    return %c0_i32, %c0_i32_0 : i32, i32
  }
  func.func @transform_2(%arg0: i32) -> (i32, i32) {
    %c0_i32 = arith.constant 0 : i32
    %c0_i32_0 = arith.constant 0 : i32
    %c0_i32_1 = arith.constant 0 : i32
    return %c0_i32, %c0_i32_0 : i32, i32
  }
  func.func @transform_3(%arg0: i32) -> (i32, i32) {
    %c0_i32 = arith.constant 0 : i32
    %c0_i32_0 = arith.constant 0 : i32
    return %arg0, %c0_i32 : i32, i32
  }
}

module attributes {stable_mosaic.version = 11 : i64} {
  func.func @two_linear_kernel(%arg0: i32, %arg1: memref<8x32xf32, #tpu.memory_space<vmem>>, %arg2: memref<32x64xf32, #tpu.memory_space<vmem>>, %arg3: memref<64x32xf32, #tpu.memory_space<vmem>>, %arg4: memref<8x32xf32, #tpu.memory_space<vmem>>) attributes {dimension_semantics = [#tpu.dimension_semantics<parallel>], iteration_bounds = array<i64: 2>, scalar_prefetch = 0 : i64, scratch_operands = 0 : i64, tpu.core_type = #tpu.core_type<tc>, window_params = [{transform_indices = @transform_0, window_bounds = array<i64: 8, 32>}, {pipeline_mode = #tpu.pipeline_mode<synchronous>, transform_indices = @transform_1, window_bounds = array<i64: 32, 64>}, {pipeline_mode = #tpu.pipeline_mode<synchronous>, transform_indices = @transform_2, window_bounds = array<i64: 64, 32>}, {transform_indices = @transform_3, window_bounds = array<i64: 8, 32>}]} {
    %c0 = arith.constant 0 : index
    %c0_0 = arith.constant 0 : index
    %0 = vector.load %arg1[%c0, %c0_0] : memref<8x32xf32, #tpu.memory_space<vmem>>, vector<8x32xf32>
    %c0_1 = arith.constant 0 : index
    %c0_2 = arith.constant 0 : index
    %1 = vector.load %arg2[%c0_1, %c0_2] : memref<32x64xf32, #tpu.memory_space<vmem>>, vector<32x64xf32>
    %cst = arith.constant dense<0.000000e+00> : vector<8x64xf32>
    %2 = tpu.matmul %0, %1, %cst {dimension_numbers = #tpu.dot_dimension_numbers<[1], [0], [0], [1], [0, 0, 1, 1], [], []>} : vector<8x32xf32>, vector<32x64xf32>, vector<8x64xf32> -> vector<8x64xf32>
    %c0_3 = arith.constant 0 : index
    %c0_4 = arith.constant 0 : index
    %3 = vector.load %arg3[%c0_3, %c0_4] : memref<64x32xf32, #tpu.memory_space<vmem>>, vector<64x32xf32>
    %cst_5 = arith.constant dense<0.000000e+00> : vector<8x32xf32>
    %4 = tpu.matmul %2, %3, %cst_5 {dimension_numbers = #tpu.dot_dimension_numbers<[1], [0], [0], [1], [0, 0, 1, 1], [], []>} : vector<8x64xf32>, vector<64x32xf32>, vector<8x32xf32> -> vector<8x32xf32>
    %c0_6 = arith.constant 0 : index
    %c0_7 = arith.constant 0 : index
    %5 = vector.load %arg4[%c0_6, %c0_7] : memref<8x32xf32, #tpu.memory_space<vmem>>, vector<8x32xf32>
    tpu.vector_store %arg4[%c0_6, %c0_7], %4 {strides = array<i32>} : memref<8x32xf32, #tpu.memory_space<vmem>>, vector<8x32xf32>,
    return
  }
  func.func @transform_0(%arg0: i32) -> (i32, i32) {
    %c0_i32 = arith.constant 0 : i32
    %c0_i32_0 = arith.constant 0 : i32
    return %arg0, %c0_i32 : i32, i32
  }
  func.func @transform_1(%arg0: i32) -> (i32, i32) {
    %c0_i32 = arith.constant 0 : i32
    %c0_i32_0 = arith.constant 0 : i32
    %c0_i32_1 = arith.constant 0 : i32
    return %c0_i32, %c0_i32_0 : i32, i32
  }
  func.func @transform_2(%arg0: i32) -> (i32, i32) {
    %c0_i32 = arith.constant 0 : i32
    %c0_i32_0 = arith.constant 0 : i32
    %c0_i32_1 = arith.constant 0 : i32
    return %c0_i32, %c0_i32_0 : i32, i32
  }
  func.func @transform_3(%arg0: i32) -> (i32, i32) {
    %c0_i32 = arith.constant 0 : i32
    %c0_i32_0 = arith.constant 0 : i32
    return %arg0, %c0_i32 : i32, i32
  }
}

</mosaic_0001>

<bundles_post_ra>
// kernel: tpu_custom_call.1
= control target key start
LH: loop header
LB: loop body
LE: loop exit
PB: predicated region body
PF: predicated region fallthrough
CT: control target
= control target key end

     0   :  { %8 = vsyncpa [#allocation3], 0  ;;  %s743_s0 = inlined_call_operand.vmem [shape: f32[16,32], index: 0, kind: input, shape index: {}]   ;;  %s744_s1 = inlined_call_operand.vmem [shape: f32[32,64], index: 1, kind: input, shape index: {}]   ;;  %s745_s2 = inlined_call_operand.vmem [shape: f32[64,32], index: 2, kind: input, shape index: {}]   ;;  %s746_s3 = inlined_call_operand.hbm [shape: f32[16,32], index: 3, kind: output, shape index: {}]  }
   0x1   :  { %10 = vsyncpa [#allocation3 + $0x1], 0  ;;  %s605_s12 = smov 0   ;;  %s607_s13 = smov 0  }
   0x2   :  { %s609_s14 = smov 0   ;;  %s611_s15 = smov 0  }
   0x3 LB: > { %s626_s16 = sadd.s32 4294967295, %s579_s15   ;;  %s401_s17 = sadd.s32 4294967294, %s579_s15   ;;  %s579_s15 = sphi %s611_s15, %s752_s15   ;;  %s575_s14 = sphi %s609_s14, %s751_s14   ;;  %s571_s13 = sphi %s607_s13, %s750_s13   ;;  %s567_s12 = sphi %s605_s12, %s749_s12  }
   0x4   : > { %s630_s18 = sadd.s32 1, %s579_s15   ;;  %s91_s19 = sadd.s32 1, %s575_s14 }
   0x5   : > { %s88_s20 = ssub.s32 %s579_s15, %s630_s18  ;;  %p101_p0 = scmp.ne.s32.totalorder %s575_s14, %s571_s13 }
   0x6   : > { %p89_p1 = scmp.eq.s32.totalorder %s88_s20, 0  ;;  %p102_p2 = scmp.eq.s32.totalorder %s626_s16, 1 }
   0x7   : > { %p107_p3 = scmp.ne.s32.totalorder %s571_s13, %s567_s12  ;;  %p108_p4 = scmp.eq.s32.totalorder %s401_s17, 1 }
   0x8   : > { %s641_s21 = scalar_select %p89_p1, %s575_s14, %s91_s19  }
   0x9   : > { %p643_p5 = por %p102_p2, %p101_p0  ;;  %p647_p6 = por %p108_p4, %p107_p3 }
   0xa   : > { %p404_p7 = scmp.ge.s32.totalorder %s579_s15, 1  ;;  %p139_p8 = scmp.lt.s32.totalorder %s579_s15, 3 }
   0xc   : > { %p140_p9 = pnand %p404_p7, %p139_p8 }
   0xd   : > { %v167_v0 = vld [vmem:[%s744_s1] sm:$0xff] (!%p140_p9)  ;;  %v168_v1 = vld [vmem:[%s744_s1 + $0x8] sm:$0xff] (!%p140_p9)  ;;  %v169_v2 = vld [vmem:[%s744_s1 + $0x10] sm:$0xff] (!%p140_p9)  ;;  %v581_v3 = vmov (!%p140_p9), 0.0|0.0   ;;  %vm582_vm0 = vmmov (!%p140_p9), 0   ;;  %v583_v6 = vmov (!%p140_p9), 0.0  }
   0xe   : > { %143 = sbr.rel (%p140_p9) target bundleno = 464 (0x1d0), region = 32  ;;  %457 = vmatprep.subr.bf16.mxu0 (!%p140_p9), %v581_v3  ;;  %v458_v4 = vpack.c.bf16 (!%p140_p9), %v168_v1, %v167_v0  ;;  %v170_v5 = vld [vmem:[%s744_s1 + $0x18] sm:$0xff] (!%p140_p9)  ;;  %435 = vmatprep.mubr.msk.f32.mxu0 (!%p140_p9), %vm582_vm0, %v583_v6  ;;  %p162_p10 = scmp.lt.s32.totalorder (!%p140_p9), %s626_s16, 1  ;;  %v245_v7 = vld [vmem:[%s745_s2] sm:$0xff] (!%p140_p9)  ;;  %v246_v8 = vld [vmem:[%s745_s2 + $0x8] sm:$0xff] (!%p140_p9)  ;;  %vm171_vm1 = vcmask (!%p140_p9), 261120  }
   0xf   : > { %463 = vmatprep.subr.bf16.mxu1 (!%p140_p9), %v581_v3  ;;  %v464_v9 = vpack.c.bf16 (!%p140_p9), %v246_v8, %v245_v7  ;;  %v247_v10 = vld [vmem:[%s745_s2 + $0x10] sm:$0xff] (!%p140_p9)  ;;  %v248_v11 = vld [vmem:[%s745_s2 + $0x18] sm:$0xff] (!%p140_p9)  ;;  %454 = vmatprep.mubr.msk.f32.mxu1 (!%p140_p9), %vm582_vm0, %v583_v6  ;;  %v461_v12 = vpack.c.bf16 (!%p140_p9), %v170_v5, %v169_v2  ;;  %v249_v14 = vld [vmem:[%s745_s2 + $0x20] sm:$0xff] (!%p140_p9)  ;;  %vm253_vm2 = vcmask (!%p140_p9), 523264   ;;  %s159_s8 = sand.u32 (!%p140_p9), 1, %s571_s13   ;;  %s410_s10 = sshll.u32 (!%p140_p9), %s626_s16, 7 }
  0x10   : > { %459 = vmatpush3.bf16.msra.mxu0 (!%p140_p9), %v458_v4  ;;  %v467_v13 = vpack.c.bf16 (!%p140_p9), %v248_v11, %v247_v10  ;;  %v250_v15 = vld [vmem:[%s745_s2 + $0x28] sm:$0xff] (!%p140_p9)  ;;  %v251_v18 = vld [vmem:[%s745_s2 + $0x30] sm:$0xff] (!%p140_p9)  ;;  %v252_v19 = vld [vmem:[%s745_s2 + $0x38] sm:$0xff] (!%p140_p9)  ;;  %s405_s9 = sshll.u32 (!%p140_p9), %s159_s8, 3  ;;  %s700_s24 = scalar_lea.hbm (!%p140_p9), %s746_s3, %s410_s10 }
  0x11   : > { %460 = vmatprep.subr.bf16.mxu0 (!%p140_p9), %v581_v3  ;;  %465 = vmatpush3.bf16.msra.mxu1 (!%p140_p9), %v464_v9  ;;  %v470_v17 = vpack.c.bf16 (!%p140_p9), %v250_v15, %v249_v14  ;;  %v473_v20 = vpack.c.bf16 (!%p140_p9), %v252_v19, %v251_v18  ;;  %s161_s11 = scalar_lea.vmem (!%p140_p9), [#allocation2], %s405_s9  ;;  %s329_s25 = scalar_lea.sflag (!%p140_p9), [#allocation3], %s159_s8 }
  0x12   : > { %466 = vmatprep.subr.bf16.mxu1 (!%p140_p9), %v581_v3  ;;  %s342_s17 = sshll.u32 (!%p140_p9), %s161_s11, 4  ;;  %s702_s17 = int_to_ptr.vmem [resolvable:$true] %s342_s17 }
  0x13   : > { %s517_s26 = scalar_lea.vmem (!%p140_p9), %s702_s17, 128 }
  0x14   : > { %462 = vmatpush3.bf16.msra.mxu0 (!%p140_p9), %v461_v12  ;;  %p518_p11 = scmp.ne.s32.totalorder (!%p140_p9), %s702_s17, %s517_s26 }
  0x15   : > { %s163_s19 = scalar_select %p162_p10, %s626_s16, 1  ;;  %468 = vmatpush3.bf16.msra.mxu1 %v467_v13 }
  0x16   : > { %469 = vmatprep.subr.bf16.mxu1 %v581_v3  ;;  %p519_p12 = pnand %p518_p11, %p643_p5  ;;  %s584_s16 = smov [#allocation2]  }
  0x17   : > { %s406_s20 = sshll.u32 %s163_s19, 3  ;;  %s521_s27 = sshll.u32 %s584_s16, 4  ;;  %s522_s27 = int_to_ptr.vmem [resolvable:$false] %s521_s27 }
  0x18   : > { %s165_s30 = scalar_lea.vmem %s743_s0, %s406_s20  ;;  %p520_p13 = pneg %p519_p12 }
  0x19   : > { %v166_v16 = vld [vmem:[%s165_s30] sm:$0xff]  ;;  %471 = vmatpush3.bf16.msra.mxu1 %v470_v17  ;;  %s523_s28 = scalar_lea.vmem %s522_s27, 256  ;;  %p524_p0 = scmp.lt.s32.totalorder %s702_s17, %s522_s27 }
  0x1a   : > { %436 = vmatmul.mubr.msk.f32.vlgmr.msra.gmra.mrb[0].mxu0 %vm171_vm1, %v166_v16  ;;  %472 = vmatprep.subr.bf16.mxu1 %v581_v3  ;;  %p525_p1 = scmp.lt.s32.totalorder %s523_s28, %s517_s26 }
  0x1c   : > { %p526_p2 = por %p525_p1, %p524_p0 }
  0x1d   : > { %474 = vmatpush3.bf16.msra.mxu1 %v473_v20 }
  0x1e   : > { %p527_p3 = pnand %p526_p2, %p520_p13 }
  0xed   : > { %v241_v21 = vpop.f32.mrb[0].mxu0 }
  0xee   : > { %v437_v22 = vpop.f32.mrb[1].mxu0  ;;  %455 = vmatmul.mubr.msk.f32.vlgmr.msra.gmra.mrb[0].mxu1 %vm253_vm2, %v241_v21 }
 0x1c1   : > { %v323_v23 = vpop.f32.mrb[0].mxu1 }
 0x1c2   : > { %327 = vst.msk [vmem:[%s161_s11] sm:$0xff] %vm171_vm1, %v323_v23  ;;  %v456_v24 = vpop.f32.mrb[1].mxu1 }
 0x1c3   : > { %530 = shalt.err (!%p527_p3)
}
 0x1c4   : > { %s531_s29 = scalar_lea.hbm %s700_s24, 128  ;;  %s535_s5 = scalar_lea.hbm %s746_s3, 256 }
 0x1c5   : > { %p532_p4 = scmp.ne.s32.totalorder %s700_s24, %s531_s29  ;;  %p536_p9 = scmp.lt.u32.totalorder %s700_s24, %s746_s3 }
 0x1c6   : > { %p537_p10 = scmp.lt.u32.totalorder %s535_s5, %s531_s29  ;;  %p539_p12 = scmp.lt.u32.totalorder %s531_s29, %s700_s24 }
 0x1c7   : > { %p533_p7 = pnand %p532_p4, %p643_p5 }
 0x1c8   : > { %p538_p11 = por %p537_p10, %p536_p9 }
 0x1c9   : > { %p534_p8 = pneg %p533_p7 }
 0x1ca   : > { %p540_p13 = por %p539_p12, %p538_p11 }
 0x1cc   : > { %p541_p0 = pnand %p540_p13, %p534_p8 }
 0x1ce   : > { %544 = shalt.err (!%p541_p0)
}
 0x1cf   : > { %475 = dma.vmem_to_hbm [thread:$0]  (%p643_p5), %s702_s17, 128, %s700_s24, %s329_s25  }
 0x1d0 PF: > { %p481_p1 = scmp.ge.s32.totalorder %s579_s15, 2  ;;  %s354_s8 = sand.u32 1, %s567_s12  }
 0x1d1   : > { %s355_s9 = scalar_lea.sflag [#allocation3], %s354_s8 }
 0x1d2   : > { %p478_p2 = pnand %p481_p1, %p647_p6 }
 0x1d4   : > { %562 = dma.done.wait (!%p478_p2), %s355_s9, 128  }
 0x1d5   : > { %564 = vsyncadd (!%p478_p2), %s355_s9, 4294967168  ;;  %p13_p3 = scmp.ge.s32.totalorder %s630_s18, 4   ;;  %s749_s12 = smov %s571_s13 }
 0x1d6   : > { %s750_s13 = smov %s575_s14  ;;  %s751_s14 = smov %s641_s21 }
 0x1d7   : > { %s752_s15 = smov %s630_s18  ;;  %15 = sbr.rel (!%p13_p3) target bundleno = 3 (0x3), region = 67 }
 0x1de   :  { %360 = vsyncpa [#allocation3], 1 }
 0x1df   :  { %362 = vsyncpa [#allocation3 + $0x1], 1 }

// kernel: tpu_custom_call.1
= control target key start
LH: loop header
LB: loop body
LE: loop exit
PB: predicated region body
PF: predicated region fallthrough
CT: control target
= control target key end

     0   :  { %8 = vsyncpa [#allocation3], 0  ;;  %s743_s0 = inlined_call_operand.vmem [shape: f32[16,32], index: 0, kind: input, shape index: {}]   ;;  %s744_s1 = inlined_call_operand.vmem [shape: f32[32,64], index: 1, kind: input, shape index: {}]   ;;  %s745_s2 = inlined_call_operand.vmem [shape: f32[64,32], index: 2, kind: input, shape index: {}]   ;;  %s746_s3 = inlined_call_operand.hbm [shape: f32[16,32], index: 3, kind: output, shape index: {}]  }
   0x1   :  { %10 = vsyncpa [#allocation3 + $0x1], 0  ;;  %s605_s12 = smov 0   ;;  %s607_s13 = smov 0  }
   0x2   :  { %s609_s14 = smov 0   ;;  %s611_s15 = smov 0  }
   0x3 LB: > { %s626_s16 = sadd.s32 4294967295, %s579_s15   ;;  %s401_s17 = sadd.s32 4294967294, %s579_s15   ;;  %s579_s15 = sphi %s611_s15, %s752_s15   ;;  %s575_s14 = sphi %s609_s14, %s751_s14   ;;  %s571_s13 = sphi %s607_s13, %s750_s13   ;;  %s567_s12 = sphi %s605_s12, %s749_s12  }
   0x4   : > { %s630_s18 = sadd.s32 1, %s579_s15   ;;  %s91_s19 = sadd.s32 1, %s575_s14 }
   0x5   : > { %s88_s20 = ssub.s32 %s579_s15, %s630_s18  ;;  %p101_p0 = scmp.ne.s32.totalorder %s575_s14, %s571_s13 }
   0x6   : > { %p89_p1 = scmp.eq.s32.totalorder %s88_s20, 0  ;;  %p102_p2 = scmp.eq.s32.totalorder %s626_s16, 1 }
   0x7   : > { %p107_p3 = scmp.ne.s32.totalorder %s571_s13, %s567_s12  ;;  %p108_p4 = scmp.eq.s32.totalorder %s401_s17, 1 }
   0x8   : > { %s641_s21 = scalar_select %p89_p1, %s575_s14, %s91_s19  }
   0x9   : > { %p643_p5 = por %p102_p2, %p101_p0  ;;  %p647_p6 = por %p108_p4, %p107_p3 }
   0xa   : > { %p404_p7 = scmp.ge.s32.totalorder %s579_s15, 1  ;;  %p139_p8 = scmp.lt.s32.totalorder %s579_s15, 3 }
   0xc   : > { %p140_p9 = pnand %p404_p7, %p139_p8 }
   0xd   : > { %v167_v0 = vld [vmem:[%s744_s1] sm:$0xff] (!%p140_p9)  ;;  %v168_v1 = vld [vmem:[%s744_s1 + $0x8] sm:$0xff] (!%p140_p9)  ;;  %v169_v2 = vld [vmem:[%s744_s1 + $0x10] sm:$0xff] (!%p140_p9)  ;;  %v581_v3 = vmov (!%p140_p9), 0.0|0.0   ;;  %vm582_vm0 = vmmov (!%p140_p9), 0   ;;  %v583_v6 = vmov (!%p140_p9), 0.0  }
   0xe   : > { %143 = sbr.rel (%p140_p9) target bundleno = 464 (0x1d0), region = 32  ;;  %457 = vmatprep.subr.bf16.mxu0 (!%p140_p9), %v581_v3  ;;  %v458_v4 = vpack.c.bf16 (!%p140_p9), %v168_v1, %v167_v0  ;;  %v170_v5 = vld [vmem:[%s744_s1 + $0x18] sm:$0xff] (!%p140_p9)  ;;  %435 = vmatprep.mubr.msk.f32.mxu0 (!%p140_p9), %vm582_vm0, %v583_v6  ;;  %p162_p10 = scmp.lt.s32.totalorder (!%p140_p9), %s626_s16, 1  ;;  %v245_v7 = vld [vmem:[%s745_s2] sm:$0xff] (!%p140_p9)  ;;  %v246_v8 = vld [vmem:[%s745_s2 + $0x8] sm:$0xff] (!%p140_p9)  ;;  %vm171_vm1 = vcmask (!%p140_p9), 261120  }
   0xf   : > { %463 = vmatprep.subr.bf16.mxu1 (!%p140_p9), %v581_v3  ;;  %v464_v9 = vpack.c.bf16 (!%p140_p9), %v246_v8, %v245_v7  ;;  %v247_v10 = vld [vmem:[%s745_s2 + $0x10] sm:$0xff] (!%p140_p9)  ;;  %v248_v11 = vld [vmem:[%s745_s2 + $0x18] sm:$0xff] (!%p140_p9)  ;;  %454 = vmatprep.mubr.msk.f32.mxu1 (!%p140_p9), %vm582_vm0, %v583_v6  ;;  %v461_v12 = vpack.c.bf16 (!%p140_p9), %v170_v5, %v169_v2  ;;  %v249_v14 = vld [vmem:[%s745_s2 + $0x20] sm:$0xff] (!%p140_p9)  ;;  %vm253_vm2 = vcmask (!%p140_p9), 523264   ;;  %s159_s8 = sand.u32 (!%p140_p9), 1, %s571_s13   ;;  %s410_s10 = sshll.u32 (!%p140_p9), %s626_s16, 7 }
  0x10   : > { %459 = vmatpush3.bf16.msra.mxu0 (!%p140_p9), %v458_v4  ;;  %v467_v13 = vpack.c.bf16 (!%p140_p9), %v248_v11, %v247_v10  ;;  %v250_v15 = vld [vmem:[%s745_s2 + $0x28] sm:$0xff] (!%p140_p9)  ;;  %v251_v18 = vld [vmem:[%s745_s2 + $0x30] sm:$0xff] (!%p140_p9)  ;;  %v252_v19 = vld [vmem:[%s745_s2 + $0x38] sm:$0xff] (!%p140_p9)  ;;  %s405_s9 = sshll.u32 (!%p140_p9), %s159_s8, 3  ;;  %s700_s24 = scalar_lea.hbm (!%p140_p9), %s746_s3, %s410_s10 }
  0x11   : > { %460 = vmatprep.subr.bf16.mxu0 (!%p140_p9), %v581_v3  ;;  %465 = vmatpush3.bf16.msra.mxu1 (!%p140_p9), %v464_v9  ;;  %v470_v17 = vpack.c.bf16 (!%p140_p9), %v250_v15, %v249_v14  ;;  %v473_v20 = vpack.c.bf16 (!%p140_p9), %v252_v19, %v251_v18  ;;  %s161_s11 = scalar_lea.vmem (!%p140_p9), [#allocation2], %s405_s9  ;;  %s329_s25 = scalar_lea.sflag (!%p140_p9), [#allocation3], %s159_s8 }
  0x12   : > { %466 = vmatprep.subr.bf16.mxu1 (!%p140_p9), %v581_v3  ;;  %s342_s17 = sshll.u32 (!%p140_p9), %s161_s11, 4  ;;  %s702_s17 = int_to_ptr.vmem [resolvable:$true] %s342_s17 }
  0x13   : > { %s517_s26 = scalar_lea.vmem (!%p140_p9), %s702_s17, 128 }
  0x14   : > { %462 = vmatpush3.bf16.msra.mxu0 (!%p140_p9), %v461_v12  ;;  %p518_p11 = scmp.ne.s32.totalorder (!%p140_p9), %s702_s17, %s517_s26 }
  0x15   : > { %s163_s19 = scalar_select %p162_p10, %s626_s16, 1  ;;  %468 = vmatpush3.bf16.msra.mxu1 %v467_v13 }
  0x16   : > { %469 = vmatprep.subr.bf16.mxu1 %v581_v3  ;;  %p519_p12 = pnand %p518_p11, %p643_p5  ;;  %s584_s16 = smov [#allocation2]  }
  0x17   : > { %s406_s20 = sshll.u32 %s163_s19, 3  ;;  %s521_s27 = sshll.u32 %s584_s16, 4  ;;  %s522_s27 = int_to_ptr.vmem [resolvable:$false] %s521_s27 }
  0x18   : > { %s165_s30 = scalar_lea.vmem %s743_s0, %s406_s20  ;;  %p520_p13 = pneg %p519_p12 }
  0x19   : > { %v166_v16 = vld [vmem:[%s165_s30] sm:$0xff]  ;;  %471 = vmatpush3.bf16.msra.mxu1 %v470_v17  ;;  %s523_s28 = scalar_lea.vmem %s522_s27, 256  ;;  %p524_p0 = scmp.lt.s32.totalorder %s702_s17, %s522_s27 }
  0x1a   : > { %436 = vmatmul.mubr.msk.f32.vlgmr.msra.gmra.mrb[0].mxu0 %vm171_vm1, %v166_v16  ;;  %472 = vmatprep.subr.bf16.mxu1 %v581_v3  ;;  %p525_p1 = scmp.lt.s32.totalorder %s523_s28, %s517_s26 }
  0x1c   : > { %p526_p2 = por %p525_p1, %p524_p0 }
  0x1d   : > { %474 = vmatpush3.bf16.msra.mxu1 %v473_v20 }
  0x1e   : > { %p527_p3 = pnand %p526_p2, %p520_p13 }
  0xed   : > { %v241_v21 = vpop.f32.mrb[0].mxu0 }
  0xee   : > { %v437_v22 = vpop.f32.mrb[1].mxu0  ;;  %455 = vmatmul.mubr.msk.f32.vlgmr.msra.gmra.mrb[0].mxu1 %vm253_vm2, %v241_v21 }
 0x1c1   : > { %v323_v23 = vpop.f32.mrb[0].mxu1 }
 0x1c2   : > { %327 = vst.msk [vmem:[%s161_s11] sm:$0xff] %vm171_vm1, %v323_v23  ;;  %v456_v24 = vpop.f32.mrb[1].mxu1 }
 0x1c3   : > { %530 = shalt.err (!%p527_p3)
}
 0x1c4   : > { %s531_s29 = scalar_lea.hbm %s700_s24, 128  ;;  %s535_s5 = scalar_lea.hbm %s746_s3, 256 }
 0x1c5   : > { %p532_p4 = scmp.ne.s32.totalorder %s700_s24, %s531_s29  ;;  %p536_p9 = scmp.lt.u32.totalorder %s700_s24, %s746_s3 }
 0x1c6   : > { %p537_p10 = scmp.lt.u32.totalorder %s535_s5, %s531_s29  ;;  %p539_p12 = scmp.lt.u32.totalorder %s531_s29, %s700_s24 }
 0x1c7   : > { %p533_p7 = pnand %p532_p4, %p643_p5 }
 0x1c8   : > { %p538_p11 = por %p537_p10, %p536_p9 }
 0x1c9   : > { %p534_p8 = pneg %p533_p7 }
 0x1ca   : > { %p540_p13 = por %p539_p12, %p538_p11 }
 0x1cc   : > { %p541_p0 = pnand %p540_p13, %p534_p8 }
 0x1ce   : > { %544 = shalt.err (!%p541_p0)
}
 0x1cf   : > { %475 = dma.vmem_to_hbm [thread:$0]  (%p643_p5), %s702_s17, 128, %s700_s24, %s329_s25  }
 0x1d0 PF: > { %p481_p1 = scmp.ge.s32.totalorder %s579_s15, 2  ;;  %s354_s8 = sand.u32 1, %s567_s12  }
 0x1d1   : > { %s355_s9 = scalar_lea.sflag [#allocation3], %s354_s8 }
 0x1d2   : > { %p478_p2 = pnand %p481_p1, %p647_p6 }
 0x1d4   : > { %562 = dma.done.wait (!%p478_p2), %s355_s9, 128  }
 0x1d5   : > { %564 = vsyncadd (!%p478_p2), %s355_s9, 4294967168  ;;  %p13_p3 = scmp.ge.s32.totalorder %s630_s18, 4   ;;  %s749_s12 = smov %s571_s13 }
 0x1d6   : > { %s750_s13 = smov %s575_s14  ;;  %s751_s14 = smov %s641_s21 }
 0x1d7   : > { %s752_s15 = smov %s630_s18  ;;  %15 = sbr.rel (!%p13_p3) target bundleno = 3 (0x3), region = 67 }
 0x1de   :  { %360 = vsyncpa [#allocation3], 1 }
 0x1df   :  { %362 = vsyncpa [#allocation3 + $0x1], 1 }

</bundles_post_ra>
